<compile_context>
chip_gen: v6e
topology: v6e:2x2x1
jax: 0.10.0
libtpu: 0.0.40
codegen_flags: <defaults>
</compile_context>

<pallas_src>
import math

import jax
import jax.numpy as jnp
from jax.experimental import pallas as pl
from jax.experimental.pallas import tpu as pltpu


def _round_up(x, m):
    return ((x + m - 1) // m) * m


def ffw_kernel(x_ref, gamma_ref, beta_ref, w1_ref, w2_ref, o_ref, acc_ref, xn_ref):
    """One (row-tile i, inner-tile j) step of LN -> Linear -> GELU -> Linear."""
    j = pl.program_id(1)

    # --- LayerNorm + affine: once per row tile, cached in bf16 for all j ---
    @pl.when(j == 0)
    def _():
        x = x_ref[...].astype(jnp.float32)                      # (tm, dim)
        mean = jnp.mean(x, axis=-1, keepdims=True)
        cen = x - mean
        var = jnp.mean(cen * cen, axis=-1, keepdims=True)
        xn = cen * jax.lax.rsqrt(var + 1e-5)                    # nn.LayerNorm eps
        xn = xn * gamma_ref[...] + beta_ref[...]                # broadcast (1, dim)
        xn_ref[...] = xn.astype(xn_ref.dtype)                   # bf16 cache
        acc_ref[...] = jnp.zeros_like(acc_ref)                  # f32 accumulator init

    # --- h_j = GELU(xn @ w1[:, j_tile])  (bf16 operands, f32 accumulate) ---
    h = jnp.dot(xn_ref[...], w1_ref[...],
                preferred_element_type=jnp.float32)             # (tm, tn) f32
    # exact / erf GELU (matches nn.GELU() default)
    h = 0.5 * h * (1.0 + jax.lax.erf(h * (1.0 / math.sqrt(2.0))))

    # --- acc += h_j @ w2[j_tile, :] ---
    acc_ref[...] += jnp.dot(h.astype(w2_ref.dtype), w2_ref[...],
                            preferred_element_type=jnp.float32)  # (tm, dim)

    # --- finalize on last inner tile ---
    @pl.when(j == pl.num_programs(1) - 1)
    def _():
        o_ref[...] = acc_ref[...].astype(o_ref.dtype)


def feed_forward(x, gamma, beta, w1, w2, *, row_tile=256, inner_tile=1024,
                 vmem_limit_bytes=None):
    """x: (..., dim). gamma/beta: (dim,). w1: (dim, inner). w2: (inner, dim)."""
    orig_shape = x.shape
    dim = orig_shape[-1]
    inner = w1.shape[1]
    assert w1.shape == (dim, inner) and w2.shape == (inner, dim)

    x2d = x.reshape(-1, dim)
    rows = x2d.shape[0]

    # Row tile: large / MXU-native, but never bigger than the (8-rounded) input.
    tm = min(row_tile, _round_up(rows, 8))
    rows_p = _round_up(rows, tm)
    if rows_p != rows:
        x2d = jnp.pad(x2d, ((0, rows_p - rows), (0, 0)))

    # Inner-dim tile: multiple of 128 (or the whole inner dim for tiny shapes).
    tn = min(inner_tile, inner)
    assert inner % tn == 0, "inner dim must be divisible by the inner tile"
    assert tn % 128 == 0 or tn == inner

    # bf16 matmul operands (f32 accumulation stays in-kernel).
    w1_b = w1.astype(jnp.bfloat16)
    w2_b = w2.astype(jnp.bfloat16)
    gamma2d = gamma.astype(jnp.float32).reshape(1, dim)
    beta2d = beta.astype(jnp.float32).reshape(1, dim)

    grid = (rows_p // tm, inner // tn)

    x_bytes = x2d.dtype.itemsize
    out_bytes = jnp.dtype(x.dtype).itemsize
    # Rough upper bound: double-buffered tiles + scratch + params.
    vmem_est = (2 * tm * dim * x_bytes          # x tile
                + 2 * dim * tn * 2              # w1 tile (bf16)
                + 2 * tn * dim * 2              # w2 tile (bf16)
                + 2 * tm * dim * out_bytes      # out tile
                + tm * dim * 4                  # f32 accumulator scratch
                + tm * dim * 2                  # bf16 LN cache scratch
                + 4 * dim * 4)                  # gamma / beta
    if vmem_limit_bytes is None:
        vmem_limit_bytes = min(128 * 1024 * 1024,
                               max(32 * 1024 * 1024, int(vmem_est * 1.5)))

    out2d = pl.pallas_call(
        ffw_kernel,
        out_shape=jax.ShapeDtypeStruct((rows_p, dim), x.dtype),
        grid_spec=pltpu.PrefetchScalarGridSpec(
            num_scalar_prefetch=0,
            grid=grid,
            in_specs=[
                pl.BlockSpec((tm, dim), lambda i, j: (i, 0)),    # x row tile
                pl.BlockSpec((1, dim), lambda i, j: (0, 0)),     # gamma
                pl.BlockSpec((1, dim), lambda i, j: (0, 0)),     # beta
                pl.BlockSpec((dim, tn), lambda i, j: (0, j)),    # w1 column tile
                pl.BlockSpec((tn, dim), lambda i, j: (j, 0)),    # w2 row tile
            ],
            out_specs=pl.BlockSpec((tm, dim), lambda i, j: (i, 0)),
            scratch_shapes=[
                pltpu.VMEM((tm, dim), jnp.float32),   # f32 output accumulator
                pltpu.VMEM((tm, dim), jnp.bfloat16),  # cached LayerNorm output
            ],
        ),
        compiler_params=pltpu.CompilerParams(
            dimension_semantics=("parallel", "arbitrary"),
            vmem_limit_bytes=vmem_limit_bytes,
        ),
        cost_estimate=pl.CostEstimate(
            flops=4 * rows_p * dim * inner,
            transcendentals=rows_p * inner,
            bytes_accessed=(rows_p * dim * (x_bytes + out_bytes)
                            + 2 * dim * inner * 2 + 2 * dim * 4),
        ),
    )(x2d, gamma2d, beta2d, w1_b, w2_b)

    return out2d[:rows].reshape(orig_shape)


if __name__ == "__main__":
    # Small shapes consistent with the module: token tensor (batch, seq, dim)
    batch, seq, dim, mult = 2, 8, 32, 4
    inner = dim * mult

    key = jax.random.PRNGKey(0)
    kx, kw1, kw2, kg, kb = jax.random.split(key, 5)

    x = jax.random.normal(kx, (batch, seq, dim), dtype=jnp.float32)

    # LayerNorm params (non-trivial to exercise the affine path)
    gamma = 1.0 + 0.1 * jax.random.normal(kg, (dim,), dtype=jnp.float32)
    beta = 0.1 * jax.random.normal(kb, (dim,), dtype=jnp.float32)
    # nn.Linear(dim, inner) weight is (inner, dim); stored transposed (dim, inner)
    w1 = jax.random.normal(kw1, (dim, inner), dtype=jnp.float32) * (1.0 / math.sqrt(dim))
    # nn.Linear(inner, dim) weight is (dim, inner); stored transposed (inner, dim)
    w2 = jax.random.normal(kw2, (inner, dim), dtype=jnp.float32) * (1.0 / math.sqrt(inner))

    out = feed_forward(x, gamma, beta, w1, w2)
    jax.block_until_ready(out)

    # Pure-JAX f32 reference. The kernel uses bf16 matmul operands with f32
    # accumulation, so compare with a correspondingly loose tolerance.
    x32 = x.astype(jnp.float32)
    mean = jnp.mean(x32, axis=-1, keepdims=True)
    var = jnp.mean((x32 - mean) ** 2, axis=-1, keepdims=True)
    xn = (x32 - mean) / jnp.sqrt(var + 1e-5) * gamma + beta
    h = xn @ w1
    h = 0.5 * h * (1.0 + jax.lax.erf(h / math.sqrt(2.0)))
    ref = h @ w2

    assert out.shape == ref.shape
    max_err = float(jnp.max(jnp.abs(out - ref)))
    assert bool(jnp.all(jnp.isfinite(out))), "non-finite output"
    assert max_err < 5e-2, f"mismatch vs reference (max err {max_err})"

    print("KERNEL_OK")
</pallas_src>

<mosaic_0001>
module attributes {stable_mosaic.version = 11 : i64} {
  func.func @ffw_kernel(%arg0: i32, %arg1: i32, %arg2: memref<16x32xf32, #tpu.memory_space<vmem>>, %arg3: memref<1x32xf32, #tpu.memory_space<vmem>>, %arg4: memref<1x32xf32, #tpu.memory_space<vmem>>, %arg5: memref<32x128xbf16, #tpu.memory_space<vmem>>, %arg6: memref<128x32xbf16, #tpu.memory_space<vmem>>, %arg7: memref<16x32xf32, #tpu.memory_space<vmem>>, %arg8: memref<16x32xf32, #tpu.memory_space<vmem>>, %arg9: memref<16x32xbf16, #tpu.memory_space<vmem>>) attributes {dimension_semantics = [#tpu.dimension_semantics<parallel>, #tpu.dimension_semantics<arbitrary>], iteration_bounds = array<i64: 1, 1>, scalar_prefetch = 0 : i64, scratch_operands = 2 : i64, tpu.core_type = #tpu.core_type<tc>, window_params = [{transform_indices = @transform_0, window_bounds = array<i64: 16, 32>}, {pipeline_mode = #tpu.pipeline_mode<synchronous>, transform_indices = @transform_1, window_bounds = array<i64: 1, 32>}, {pipeline_mode = #tpu.pipeline_mode<synchronous>, transform_indices = @transform_2, window_bounds = array<i64: 1, 32>}, {transform_indices = @transform_3, window_bounds = array<i64: 32, 128>}, {transform_indices = @transform_4, window_bounds = array<i64: 128, 32>}, {transform_indices = @transform_5, window_bounds = array<i64: 16, 32>}]} {
    %c0_i32 = arith.constant 0 : i32
    %0 = arith.cmpi eq, %arg1, %c0_i32 : i32
    %1 = arith.extui %0 : i1 to i32
    %c0_i32_0 = arith.constant 0 : i32
    %2 = arith.cmpi ne, %1, %c0_i32_0 : i32
    scf.if %2 {
      %c0_16 = arith.constant 0 : index
      %c0_17 = arith.constant 0 : index
      %23 = vector.load %arg2[%c0_16, %c0_17] : memref<16x32xf32, #tpu.memory_space<vmem>>, vector<16x32xf32>
      %cst_18 = arith.constant dense<0.000000e+00> : vector<16xf32>
      %24 = vector.multi_reduction <add>, %23, %cst_18 [1] : vector<16x32xf32> to vector<16xf32>
      %25 = vector.shape_cast %24 : vector<16xf32> to vector<16x1xf32>
      %cst_19 = arith.constant 3.200000e+01 : f32
      %26 = vector.broadcast %cst_19 : f32 to vector<16x1xf32>
      %27 = arith.divf %25, %26 : vector<16x1xf32>
      %28 = vector.broadcast %27 : vector<16x1xf32> to vector<16x32xf32>
      %29 = arith.subf %23, %28 : vector<16x32xf32>
      %30 = arith.mulf %29, %29 : vector<16x32xf32>
      %cst_20 = arith.constant dense<0.000000e+00> : vector<16xf32>
      %31 = vector.multi_reduction <add>, %30, %cst_20 [1] : vector<16x32xf32> to vector<16xf32>
      %32 = vector.shape_cast %31 : vector<16xf32> to vector<16x1xf32>
      %cst_21 = arith.constant 3.200000e+01 : f32
      %33 = vector.broadcast %cst_21 : f32 to vector<16x1xf32>
      %34 = arith.divf %32, %33 : vector<16x1xf32>
      %cst_22 = arith.constant 9.99999974E-6 : f32
      %35 = vector.broadcast %cst_22 : f32 to vector<16x1xf32>
      %36 = arith.addf %34, %35 : vector<16x1xf32>
      %37 = math.rsqrt %36 : vector<16x1xf32>
      %38 = vector.broadcast %37 : vector<16x1xf32> to vector<16x32xf32>
      %39 = arith.mulf %29, %38 : vector<16x32xf32>
      %c0_23 = arith.constant 0 : index
      %c0_24 = arith.constant 0 : index
      %40 = vector.load %arg3[%c0_23, %c0_24] : memref<1x32xf32, #tpu.memory_space<vmem>>, vector<1x32xf32>
      %41 = vector.broadcast %40 : vector<1x32xf32> to vector<16x32xf32>
      %42 = arith.mulf %39, %41 : vector<16x32xf32>
      %c0_25 = arith.constant 0 : index
      %c0_26 = arith.constant 0 : index
      %43 = vector.load %arg4[%c0_25, %c0_26] : memref<1x32xf32, #tpu.memory_space<vmem>>, vector<1x32xf32>
      %44 = vector.broadcast %43 : vector<1x32xf32> to vector<16x32xf32>
      %45 = arith.addf %42, %44 : vector<16x32xf32>
      %46 = arith.truncf %45 : vector<16x32xf32> to vector<16x32xbf16>
      %c0_27 = arith.constant 0 : index
      %c0_28 = arith.constant 0 : index
      %47 = vector.load %arg9[%c0_27, %c0_28] : memref<16x32xbf16, #tpu.memory_space<vmem>>, vector<16x32xbf16>
      tpu.vector_store %arg9[%c0_27, %c0_28], %46 {strides = array<i32>} : memref<16x32xbf16, #tpu.memory_space<vmem>>, vector<16x32xbf16>,
      %cst_29 = arith.constant 0.000000e+00 : f32
      %48 = vector.broadcast %cst_29 : f32 to vector<16x32xf32>
      %c0_30 = arith.constant 0 : index
      %c0_31 = arith.constant 0 : index
      %49 = vector.load %arg8[%c0_30, %c0_31] : memref<16x32xf32, #tpu.memory_space<vmem>>, vector<16x32xf32>
      tpu.vector_store %arg8[%c0_30, %c0_31], %48 {strides = array<i32>} : memref<16x32xf32, #tpu.memory_space<vmem>>, vector<16x32xf32>,
    } else {
    }
    %c0 = arith.constant 0 : index
    %c0_1 = arith.constant 0 : index
    %3 = vector.load %arg9[%c0, %c0_1] : memref<16x32xbf16, #tpu.memory_space<vmem>>, vector<16x32xbf16>
    %c0_2 = arith.constant 0 : index
    %c0_3 = arith.constant 0 : index
    %4 = vector.load %arg5[%c0_2, %c0_3] : memref<32x128xbf16, #tpu.memory_space<vmem>>, vector<32x128xbf16>
    %cst = arith.constant dense<0.000000e+00> : vector<16x128xf32>
    %5 = tpu.matmul %3, %4, %cst {dimension_numbers = #tpu.dot_dimension_numbers<[1], [0], [0], [1], [0, 0, 1, 1], [], []>} : vector<16x32xbf16>, vector<32x128xbf16>, vector<16x128xf32> -> vector<16x128xf32>
    %cst_4 = arith.constant 5.000000e-01 : f32
    %6 = vector.broadcast %cst_4 : f32 to vector<16x128xf32>
    %7 = arith.mulf %6, %5 : vector<16x128xf32>
    %cst_5 = arith.constant 0.707106769 : f32
    %8 = vector.broadcast %cst_5 : f32 to vector<16x128xf32>
    %9 = arith.mulf %5, %8 : vector<16x128xf32>
    %10 = math.erf %9 : vector<16x128xf32>
    %cst_6 = arith.constant 1.000000e+00 : f32
    %11 = vector.broadcast %cst_6 : f32 to vector<16x128xf32>
    %12 = arith.addf %11, %10 : vector<16x128xf32>
    %13 = arith.mulf %7, %12 : vector<16x128xf32>
    %c0_7 = arith.constant 0 : index
    %c0_8 = arith.constant 0 : index
    %14 = vector.load %arg8[%c0_7, %c0_8] : memref<16x32xf32, #tpu.memory_space<vmem>>, vector<16x32xf32>
    %15 = arith.truncf %13 : vector<16x128xf32> to vector<16x128xbf16>
    %c0_9 = arith.constant 0 : index
    %c0_10 = arith.constant 0 : index
    %16 = vector.load %arg6[%c0_9, %c0_10] : memref<128x32xbf16, #tpu.memory_space<vmem>>, vector<128x32xbf16>
    %cst_11 = arith.constant dense<0.000000e+00> : vector<16x32xf32>
    %17 = tpu.matmul %15, %16, %cst_11 {dimension_numbers = #tpu.dot_dimension_numbers<[1], [0], [0], [1], [0, 0, 1, 1], [], []>} : vector<16x128xbf16>, vector<128x32xbf16>, vector<16x32xf32> -> vector<16x32xf32>
    %18 = arith.addf %14, %17 : vector<16x32xf32>
    %c0_12 = arith.constant 0 : index
    %c0_13 = arith.constant 0 : index
    %19 = vector.load %arg8[%c0_12, %c0_13] : memref<16x32xf32, #tpu.memory_space<vmem>>, vector<16x32xf32>
    tpu.vector_store %arg8[%c0_12, %c0_13], %18 {strides = array<i32>} : memref<16x32xf32, #tpu.memory_space<vmem>>, vector<16x32xf32>,
    %c0_i32_14 = arith.constant 0 : i32
    %20 = arith.cmpi eq, %arg1, %c0_i32_14 : i32
    %21 = arith.extui %20 : i1 to i32
    %c0_i32_15 = arith.constant 0 : i32
    %22 = arith.cmpi ne, %21, %c0_i32_15 : i32
    scf.if %22 {
      %c0_16 = arith.constant 0 : index
      %c0_17 = arith.constant 0 : index
      %23 = vector.load %arg8[%c0_16, %c0_17] : memref<16x32xf32, #tpu.memory_space<vmem>>, vector<16x32xf32>
      %c0_18 = arith.constant 0 : index
      %c0_19 = arith.constant 0 : index
      %24 = vector.load %arg7[%c0_18, %c0_19] : memref<16x32xf32, #tpu.memory_space<vmem>>, vector<16x32xf32>
      tpu.vector_store %arg7[%c0_18, %c0_19], %23 {strides = array<i32>} : memref<16x32xf32, #tpu.memory_space<vmem>>, vector<16x32xf32>,
    } else {
    }
    return
  }
  func.func @transform_0(%arg0: i32, %arg1: i32) -> (i32, i32) {
    %c0_i32 = arith.constant 0 : i32
    %c0_i32_0 = arith.constant 0 : i32
    return %arg0, %c0_i32 : i32, i32
  }
  func.func @transform_1(%arg0: i32, %arg1: i32) -> (i32, i32) {
    %c0_i32 = arith.constant 0 : i32
    %c0_i32_0 = arith.constant 0 : i32
    %c0_i32_1 = arith.constant 0 : i32
    return %c0_i32, %c0_i32_0 : i32, i32
  }
  func.func @transform_2(%arg0: i32, %arg1: i32) -> (i32, i32) {
    %c0_i32 = arith.constant 0 : i32
    %c0_i32_0 = arith.constant 0 : i32
    %c0_i32_1 = arith.constant 0 : i32
    return %c0_i32, %c0_i32_0 : i32, i32
  }
  func.func @transform_3(%arg0: i32, %arg1: i32) -> (i32, i32) {
    %c0_i32 = arith.constant 0 : i32
    %c0_i32_0 = arith.constant 0 : i32
    return %c0_i32, %arg1 : i32, i32
  }
  func.func @transform_4(%arg0: i32, %arg1: i32) -> (i32, i32) {
    %c0_i32 = arith.constant 0 : i32
    %c0_i32_0 = arith.constant 0 : i32
    return %arg1, %c0_i32 : i32, i32
  }
  func.func @transform_5(%arg0: i32, %arg1: i32) -> (i32, i32) {
    %c0_i32 = arith.constant 0 : i32
    %c0_i32_0 = arith.constant 0 : i32
    return %arg0, %c0_i32 : i32, i32
  }
}

</mosaic_0001>

<bundles_post_ra>
// kernel: tpu_custom_call.1
= control target key start
LH: loop header
LB: loop body
LE: loop exit
PB: predicated region body
PF: predicated region fallthrough
CT: control target
= control target key end

     0   :  { %vm28_vm0 = vcmask 261120   ;;  %s495_s0 = inlined_call_operand.vmem [shape: f32[16,32], index: 0, kind: input, shape index: {}]   ;;  %s496_s1 = inlined_call_operand.vmem [shape: f32[1,32], index: 1, kind: input, shape index: {}]   ;;  %s497_s2 = inlined_call_operand.vmem [shape: f32[1,32], index: 2, kind: input, shape index: {}]   ;;  %s498_s3 = inlined_call_operand.vmem [shape: bf16[32,128], index: 3, kind: input, shape index: {}]   ;;  %s499_s4 = inlined_call_operand.vmem [shape: bf16[128,32], index: 4, kind: input, shape index: {}]   ;;  %s500_s5 = inlined_call_operand.hbm [shape: f32[16,32], index: 5, kind: output, shape index: {}]  }
   0x1   :  { %v26_v0 = vld [vmem:[%s495_s0] sm:$0xff]  ;;  %v27_v1 = vld [vmem:[%s495_s0 + $0x8] sm:$0xff] }
   0x2   :  { %v29_v2 = vsel %vm28_vm0, %v26_v0, 0.0  ;;  %v32_v3 = vsel %vm28_vm0, %v27_v1, 0.0 }
   0x3   :  { %30 = vadd.xlane.f32.xlu0 %v29_v2 }
   0x7   :  { %33 = vadd.xlane.f32.xlu0 %v32_v3 }
   0x8   :  { %10 = vsyncpa [#allocation5], 0  ;;  %v363_v14 = vld [vmem:[%s498_s3 + $0x8] sm:$0xff]   ;;  %v404_v15 = vmov 0.0   ;;  %vm405_vm1 = vmmov 0   ;;  %v364_v16 = vld [vmem:[%s498_s3] sm:$0xff]  }
   0x9   :  { %330 = vmatprep.subr.bf16.mxu0 %v404_v15  ;;  %85 = vst.msk [vmem:[#allocation2] sm:$0xff] %vm28_vm0, %v404_v15  ;;  %86 = vst.msk [vmem:[#allocation2 + $0x8] sm:$0xff] %vm28_vm0, %v404_v15  ;;  %334 = vmatprep.mubr.msk.bf16.mxu0 %vm405_vm1, %v404_v15  ;;  %v366_v17 = vld [vmem:[%s499_s4 + $0x38] sm:$0xff]   ;;  %v300_v25 = vld [vmem:[%s496_s1] ss:$0 sm:$0xff]  ;;  %vm82_vm2 = vcmask 257024  }
   0xa   :  { %331 = vmatpush3.bf16.msra.mxu0 %v363_v14  ;;  %338 = vmatprep.subr.bf16.mxu1 %v404_v15  ;;  %v301_v27 = vld [vmem:[%s497_s2] ss:$0 sm:$0xff]  ;;  %v367_v37 = vld [vmem:[%s499_s4 + $0x30] sm:$0xff]   ;;  %v368_v38 = vld [vmem:[%s499_s4 + $0x28] sm:$0xff]  }
   0xb   :  { %332 = vmatprep.subr.bf16.mxu0 %v404_v15  ;;  %354 = vmatprep.mubr.msk.bf16.mxu1 %vm405_vm1, %v404_v15  ;;  %v369_v39 = vld [vmem:[%s499_s4 + $0x20] sm:$0xff]   ;;  %v370_v40 = vld [vmem:[%s499_s4 + $0x18] sm:$0xff]   ;;  %v371_v41 = vld [vmem:[%s499_s4 + $0x10] sm:$0xff]  }
   0xc   :  { %339 = vmatpush3.bf16.msra.mxu1 %v366_v17  ;;  %v372_v42 = vld [vmem:[%s499_s4 + $0x8] sm:$0xff]   ;;  %v373_v43 = vld [vmem:[%s499_s4] sm:$0xff]   ;;  %s406_s4 = smov [#allocation4]  }
   0xd   :  { %340 = vmatprep.subr.bf16.mxu1 %v404_v15  ;;  %s289_s17 = sshll.u32 %s406_s4, 4  ;;  %s290_s17 = int_to_ptr.vmem [resolvable:$true] %s289_s17 }
   0xe   :  { %333 = vmatpush3.bf16.msra.mxu0 %v364_v16  ;;  %s382_s18 = scalar_lea.vmem %s290_s17, 256  ;;  %p387_p1 = scmp.lt.s32.totalorder %s290_s17, %s290_s17 }
   0xf   :  { %p383_p0 = scmp.ne.s32.totalorder %s290_s17, %s382_s18  ;;  %p388_p2 = scmp.lt.s32.totalorder %s382_s18, %s382_s18 }
  0x10   :  { %341 = vmatpush3.bf16.msra.mxu1 %v367_v37  ;;  %v165_v59 = vld [vmem:[#allocation2] sm:$0xff]  ;;  %v166_v63 = vld [vmem:[#allocation2 + $0x8] sm:$0xff] }
  0x11   :  { %342 = vmatprep.subr.bf16.mxu1 %v404_v15  ;;  %p389_p3 = por %p388_p2, %p387_p1 }
  0x13   :  { %p390_p4 = pnand %p389_p3, %p383_p0 }
  0x14   :  { %343 = vmatpush3.bf16.msra.mxu1 %v368_v38 }
  0x15   :  { %344 = vmatprep.subr.bf16.mxu1 %v404_v15 }
  0x18   :  { %345 = vmatpush3.bf16.msra.mxu1 %v369_v39 }
  0x19   :  { %346 = vmatprep.subr.bf16.mxu1 %v404_v15 }
  0x1c   :  { %347 = vmatpush3.bf16.msra.mxu1 %v370_v40 }
  0x1d   :  { %348 = vmatprep.subr.bf16.mxu1 %v404_v15 }
  0x20   :  { %349 = vmatpush3.bf16.msra.mxu1 %v371_v41 }
  0x21   :  { %350 = vmatprep.subr.bf16.mxu1 %v404_v15 }
  0x24   :  { %351 = vmatpush3.bf16.msra.mxu1 %v372_v42 }
  0x25   :  { %352 = vmatprep.subr.bf16.mxu1 %v404_v15 }
  0x28   :  { %353 = vmatpush3.bf16.msra.mxu1 %v373_v43 }
  0x8c   :  { %v31_v4 = vpop.xlane.xlu0 %30 }
  0x8d   :  { %v36_v5 = vmul.f32 0.03125, %v31_v4 }
  0x8f   :  { %v38_v6 = vsub.f32 %v26_v0, %v36_v5 }
  0x90   :  { %v34_v7 = vpop.xlane.xlu0 %33 }
  0x91   :  { %v37_v8 = vmul.f32 0.03125, %v34_v7  ;;  %v40_v9 = vmul.f32 %v38_v6, %v38_v6 }
  0x93   :  { %v39_v10 = vsub.f32 %v27_v1, %v37_v8  ;;  %v42_v11 = vsel %vm28_vm0, %v40_v9, 0.0 }
  0x94   :  { %43 = vadd.xlane.f32.xlu1 %v42_v11 }
  0x95   :  { %v41_v12 = vmul.f32 %v39_v10, %v39_v10 }
  0x97   :  { %v45_v13 = vsel %vm28_vm0, %v41_v12, 0.0 }
  0x98   :  { %46 = vadd.xlane.f32.xlu1 %v45_v13 }
 0x11d   :  { %v44_v18 = vpop.xlane.xlu1 %43 }
 0x11e   :  { %v48_v19 = vmul.f32 0.03125, %v44_v18 }
 0x120   :  { %v50_v20 = vadd.f32 1e-05, %v48_v19 }
 0x121   :  { %v47_v21 = vpop.xlane.xlu1 %46 }
 0x122   :  { %374 = vrsqrt.f32 %v50_v20  ;;  %v49_v22 = vmul.f32 0.03125, %v47_v21 }
 0x124   :  { %v51_v23 = vadd.f32 1e-05, %v49_v22 }
 0x126   :  { %376 = vrsqrt.f32 %v51_v23 }
 0x12f   :  { %v375_v24 = vpop.eup %374 }
 0x130   :  { %v54_v26 = vmul.f32 %v375_v24, %v38_v6 }
 0x132   :  { %v63_v28 = vmul.f32 %v300_v25, %v54_v26 }
 0x133   :  { %v377_v29 = vpop.eup %376 }
 0x134   :  { %v72_v30 = vadd.f32 %v301_v27, %v63_v28  ;;  %v55_v31 = vmul.f32 %v377_v29, %v39_v10 }
 0x136   :  { %v316_v32 = vpack.c.bf16 %v72_v30, %v72_v30  ;;  %v64_v33 = vmul.f32 %v300_v25, %v55_v31 }
 0x138   :  { %83 = vst.msk [vmem:[#allocation3] sm:$0xf] %vm82_vm2, %v316_v32  ;;  %v73_v34 = vadd.f32 %v301_v27, %v64_v33 }
 0x13a   :  { %v317_v35 = vpack.c.bf16 %v73_v34, %v73_v34 }
 0x13c   :  { %84 = vst.msk [vmem:[#allocation3 + $0x4] sm:$0xf] %vm82_vm2, %v317_v35 }
 0x143   :  { %v365_v36 = vld [vmem:[#allocation3] sm:$0xff]  }
 0x144   :  { %335 = vmatmul.mubr.msk.bf16.vlgmr.msra.gmra.mxu0 %vm28_vm0, %v365_v36 }
 0x204   :  { %v148_v44 = vpop.f32.mrf.mxu0 }
 0x205   :  { %v157_v45 = vmul.f32 0.70710677, %v148_v44  ;;  %v155_v53 = vmul.f32 0.5, %v148_v44 }
 0x206   :  { %v336_v46 = vpop.f32.mrf.mxu0 }
 0x207   :  { %378 = verf.f32 %v157_v45 }
 0x208   :  { %v151_v47 = vpop.f32.mrf.mxu0 }
 0x209   :  { %v158_v48 = vmul.f32 0.70710677, %v151_v47  ;;  %v156_v54 = vmul.f32 0.5, %v151_v47 }
 0x20a   :  { %v337_v49 = vpop.f32.mrf.mxu0 }
 0x20b   :  { %380 = verf.f32 %v158_v48 }
 0x214   :  { %v379_v50 = vpop.eup %378 }
 0x215   :  { %v161_v51 = vadd.f32 1.0, %v379_v50 }
 0x217   :  { %v163_v56 = vmul.f32 %v161_v51, %v155_v53 }
 0x218   :  { %v381_v52 = vpop.eup %380 }
 0x219   :  { %v162_v55 = vadd.f32 1.0, %v381_v52 }
 0x21b   :  { %v164_v57 = vmul.f32 %v162_v55, %v156_v54 }
 0x21d   :  { %v167_v58 = vpack.c.bf16 %v164_v57, %v163_v56 }
 0x21f   :  { %355 = vmatmul.mubr.bf16.vlgmr.msra.gmra.mxu1 %v167_v58 }
 0x2df   :  { %v266_v60 = vpop.f32.mrf.mxu1 }
 0x2e0   :  { %v273_v61 = vadd.f32 %v266_v60, %v165_v59 }
 0x2e1   :  { %v356_v62 = vpop.f32.mrf.mxu1 }
 0x2e2   :  { %275 = vst.msk [vmem:[#allocation2] sm:$0xff] %vm28_vm0, %v273_v61 }
 0x2e3   :  { %v269_v0 = vpop.f32.mrf.mxu1 }
 0x2e4   :  { %v274_v1 = vadd.f32 %v269_v0, %v166_v63 }
 0x2e5   :  { %v357_v2 = vpop.f32.mrf.mxu1 }
 0x2e6   :  { %276 = vst.msk [vmem:[#allocation2 + $0x8] sm:$0xff] %vm28_vm0, %v274_v1 }
 0x2e9   :  { %v280_v3 = vld [vmem:[#allocation2] sm:$0xff] }
 0x2ea   :  { %282 = vst.msk [vmem:[#allocation4] sm:$0xff] %vm28_vm0, %v280_v3 }
 0x2ed   :  { %v281_v4 = vld [vmem:[#allocation2 + $0x8] sm:$0xff] }
 0x2ee   :  { %283 = vst.msk [vmem:[#allocation4 + $0x8] sm:$0xff] %vm28_vm0, %v281_v4 }
 0x2ef   :  { %393 = shalt.err (!%p390_p4)
}
 0x2f0   :  { %s407_s19 = smov 128   ;;  %s408_s20 = smov 8  }
 0x2f1   :  { %295 = dma.vmem_to_hbm [thread:$0]  %s290_s17, 256, %s500_s5, [#allocation5], %s407_s19, %s407_s19, %s408_s20  }
 0x2f2   :  { %402 = dma.done.wait [#allocation5], 256  }
 0x2f3   :  { %403 = vsyncadd [#allocation5], 4294967040 }
 0x2f4   :  { %299 = vsyncpa [#allocation5], 1 }

</bundles_post_ra>
